<compile_context>
chip_gen: v6e
topology: v6e:2x2x1
jax: 0.10.0
libtpu: 0.0.40
codegen_flags: <defaults>
</compile_context>

<pallas_src>
import math

import jax
import jax.numpy as jnp
from jax.experimental import pallas as pl
from jax.experimental.pallas import tpu as pltpu

SP_SIZE = 1

# --- fused-sincos constants (float32 Cody-Waite split of pi/2 + cephes polys) ---
_TWO_OVER_PI = 0.6366197723675814
_PIO2_A = 1.57073974609375              # pi/2 high bits (exact in f32)
_PIO2_B = 5.657970905303955078e-05      # pi/2 mid bits  (exact in f32)
_PIO2_C = 9.920936294705029468e-10      # pi/2 tail
_S1, _S2, _S3 = -1.6666654611e-1, 8.3321608736e-3, -1.9515295891e-4
_C1, _C2, _C3 = 4.166664568298827e-2, -1.388731625493765e-3, 2.443315711809948e-5


# -----------------------------------------------------------------------------
# Position-grid construction (linspace / meshgrid glue) stays in plain JAX.
# -----------------------------------------------------------------------------
def _centers(start, stop, num, dtype=jnp.float32):
    edges = jnp.linspace(start, stop, num + 1, dtype=dtype)
    return (edges[:-1] + edges[1:]) / 2.0


def _get_positions(num_frames, height, width, target_area, dtype=jnp.float32):
    scale = math.sqrt(target_area / float(height * width))
    t = jnp.arange(num_frames * SP_SIZE, dtype=dtype)
    h = _centers(-height * scale / 2.0, height * scale / 2.0, height, dtype)
    w = _centers(-width * scale / 2.0, width * scale / 2.0, width, dtype)
    grid_t, grid_h, grid_w = jnp.meshgrid(t, h, w, indexing="ij")
    positions = jnp.stack([grid_t, grid_h, grid_w], axis=-1).reshape(-1, 3)
    return positions


def _round_up(x, m):
    return ((x + m - 1) // m) * m


# -----------------------------------------------------------------------------
# Pallas kernel:
#   f[n, hf] = sum_d pos[n, d] * freq[d, hf]
#   cos_out  = cos(f), sin_out = sin(f)   (fused sincos, shared range reduction)
# -----------------------------------------------------------------------------
def _rope_kernel(pos_ref, freq_ref, cos_ref, sin_ref):
    # pos_ref:  (tn, 3)   f32
    # freq_ref: (3, HF)   f32
    # cos_ref:  (tn, HF)  out dtype
    # sin_ref:  (tn, HF)  out dtype
    pos = pos_ref[...]
    freq = freq_ref[...]

    # VPU FMAs instead of a degenerate K=3 MXU contraction.
    f = (pos[:, 0:1] * freq[0:1, :]
         + pos[:, 1:2] * freq[1:2, :]
         + pos[:, 2:3] * freq[2:3, :])                       # (tn, HF) f32

    # --- fused sincos: one range reduction, two polynomials, quadrant select ---
    k = jnp.floor(f * _TWO_OVER_PI + 0.5)                    # nearest quadrant (float)
    r = ((f - k * _PIO2_A) - k * _PIO2_B) - k * _PIO2_C      # |r| <= pi/4
    r2 = r * r
    sin_r = r + r * r2 * (_S1 + r2 * (_S2 + r2 * _S3))
    cos_r = 1.0 - 0.5 * r2 + r2 * r2 * (_C1 + r2 * (_C2 + r2 * _C3))

    q = k.astype(jnp.int32)
    swap = (q & 1) == 1                                      # odd quadrant: swap sin/cos
    sin_v = jnp.where(swap, cos_r, sin_r)
    cos_v = jnp.where(swap, sin_r, cos_r)
    sin_v = jnp.where((q & 2) == 2, -sin_v, sin_v)           # q in {2,3}: sin negative
    cos_v = jnp.where(((q + 1) & 2) == 2, -cos_v, cos_v)     # q in {1,2}: cos negative

    cos_ref[...] = cos_v.astype(cos_ref.dtype)
    sin_ref[...] = sin_v.astype(sin_ref.dtype)


def mochi_rope_forward(pos_frequencies, num_frames, height, width,
                       base_height=192, base_width=192, tn=1024,
                       out_dtype=jnp.float32):
    """Returns (rope_cos, rope_sin), each of shape (N, H, F) in `out_dtype`."""
    target_area = base_height * base_width
    pos = _get_positions(num_frames, height, width, target_area).astype(jnp.float32)

    d, H, F = pos_frequencies.shape
    assert d == 3
    HF = H * F
    freqs_flat = pos_frequencies.astype(jnp.float32).reshape(3, HF)

    N = pos.shape[0]
    out_itemsize = jnp.dtype(out_dtype).itemsize

    # --- per-generation VMEM cap (≈96 MiB v5e/v6e, ≈48 MiB v7x) ---
    try:
        info = pltpu.get_tpu_info()
        vmem_hw = int(getattr(info, "vmem_capacity_bytes", 64 * 1024 * 1024))
    except Exception:
        vmem_hw = 64 * 1024 * 1024
    vmem_cap = (3 * vmem_hw) // 4

    # --- tile selection ---
    tn = min(int(tn), _round_up(N, 8))
    if N >= 16:
        # at least 2 grid steps so v7x's two TensorCores both get work
        tn = min(tn, _round_up((N + 1) // 2, 8))
    tn = max(8, _round_up(tn, 8))

    hf_lanes = _round_up(HF, 128)

    def _vmem_need(t):
        pos_tile = t * 128 * 4                     # (t, 3) lane-padded to 128, f32
        out_tile = t * hf_lanes * out_itemsize     # one output tile
        freq_tile = 8 * hf_lanes * 4               # (3, HF) sublane-padded to 8
        temps = 6 * t * hf_lanes * 4               # f, r, r2, sin_r, cos_r, selects
        return 2 * (pos_tile + 2 * out_tile) + 2 * freq_tile + temps

    while tn > 8 and _vmem_need(tn) > vmem_cap:
        tn = max(8, _round_up(tn // 2, 8))
    vmem_limit = int(min(vmem_hw, max(32 * 1024 * 1024, _vmem_need(tn) + (4 << 20))))

    # --- ragged N: pad rows up to a tile multiple, slice the result back ---
    N_pad = _round_up(N, tn)
    if N_pad != N:
        pos = jnp.pad(pos, ((0, N_pad - N), (0, 0)))

    grid = (N_pad // tn,)

    cost = pl.CostEstimate(
        flops=30 * N_pad * HF,                                 # FMA + fused sincos VALU work
        transcendentals=0,
        bytes_accessed=2 * N_pad * HF * out_itemsize + N_pad * 3 * 4 + 3 * HF * 4,
    )

    cos_full, sin_full = pl.pallas_call(
        _rope_kernel,
        out_shape=(jax.ShapeDtypeStruct((N_pad, HF), out_dtype),
                   jax.ShapeDtypeStruct((N_pad, HF), out_dtype)),
        grid_spec=pltpu.PrefetchScalarGridSpec(
            num_scalar_prefetch=0,
            grid=grid,
            in_specs=[
                pl.BlockSpec((tn, 3), lambda i: (i, 0)),
                pl.BlockSpec((3, HF), lambda i: (0, 0)),   # tiny; stays resident
            ],
            out_specs=[
                pl.BlockSpec((tn, HF), lambda i: (i, 0)),
                pl.BlockSpec((tn, HF), lambda i: (i, 0)),
            ],
        ),
        compiler_params=pltpu.CompilerParams(
            dimension_semantics=("parallel",),
            vmem_limit_bytes=vmem_limit,
        ),
        cost_estimate=cost,
    )(pos, freqs_flat)

    if N_pad != N:
        cos_full = cos_full[:N]
        sin_full = sin_full[:N]
    rope_cos = cos_full.reshape(N, H, F)
    rope_sin = sin_full.reshape(N, H, F)
    return rope_cos, rope_sin


# -----------------------------------------------------------------------------
# Pure-JAX reference
# -----------------------------------------------------------------------------
def _reference(pos_frequencies, num_frames, height, width,
               base_height=192, base_width=192):
    target_area = base_height * base_width
    pos = _get_positions(num_frames, height, width, target_area).astype(jnp.float32)
    f = jnp.einsum("nd,dhf->nhf", pos, pos_frequencies.astype(jnp.float32))
    return jnp.cos(f), jnp.sin(f)


if __name__ == "__main__":
    key = jax.random.PRNGKey(0)
    # Small shapes: 3 position axes, 4 heads, 16 frequencies per head (HF = 64).
    H, F = 4, 16
    pos_frequencies = jax.random.normal(key, (3, H, F), dtype=jnp.float32) * 0.02

    # Case 1: N = 2*1*8*8 = 128 rows, f32 output (exercises the 2-step parallel grid).
    num_frames, height, width = 2, 8, 8
    cos, sin = mochi_rope_forward(pos_frequencies, num_frames, height, width)
    cos, sin = jax.block_until_ready((cos, sin))
    ref_cos, ref_sin = _reference(pos_frequencies, num_frames, height, width)
    assert cos.shape == (128, H, F) and sin.shape == (128, H, F)
    assert jnp.allclose(cos, ref_cos, atol=1e-5, rtol=1e-5)
    assert jnp.allclose(sin, ref_sin, atol=1e-5, rtol=1e-5)

    # Case 2: ragged N (3*6*10 = 180 rows), exercises the pad-and-slice path.
    num_frames2, height2, width2 = 3, 6, 10
    cos2, sin2 = mochi_rope_forward(pos_frequencies, num_frames2, height2, width2)
    cos2, sin2 = jax.block_until_ready((cos2, sin2))
    ref_cos2, ref_sin2 = _reference(pos_frequencies, num_frames2, height2, width2)
    assert cos2.shape == (180, H, F) and sin2.shape == (180, H, F)
    assert jnp.allclose(cos2, ref_cos2, atol=1e-5, rtol=1e-5)
    assert jnp.allclose(sin2, ref_sin2, atol=1e-5, rtol=1e-5)

    # Case 3: bf16 output path (halves HBM write traffic, mainly useful on v5e).
    cos_bf, sin_bf = mochi_rope_forward(pos_frequencies, num_frames, height, width,
                                        out_dtype=jnp.bfloat16)
    cos_bf, sin_bf = jax.block_until_ready((cos_bf, sin_bf))
    assert cos_bf.dtype == jnp.bfloat16 and sin_bf.dtype == jnp.bfloat16
    assert jnp.allclose(cos_bf.astype(jnp.float32), ref_cos, atol=2e-2)
    assert jnp.allclose(sin_bf.astype(jnp.float32), ref_sin, atol=2e-2)

    print("KERNEL_OK")
</pallas_src>

<mosaic_0001>
module attributes {stable_mosaic.version = 11 : i64} {
  func.func @_rope_kernel(%arg0: i32, %arg1: memref<64x3xf32, #tpu.memory_space<vmem>>, %arg2: memref<3x64xf32, #tpu.memory_space<vmem>>, %arg3: memref<64x64xf32, #tpu.memory_space<vmem>>, %arg4: memref<64x64xf32, #tpu.memory_space<vmem>>) attributes {dimension_semantics = [#tpu.dimension_semantics<parallel>], iteration_bounds = array<i64: 2>, scalar_prefetch = 0 : i64, scratch_operands = 0 : i64, tpu.core_type = #tpu.core_type<tc>, window_params = [{transform_indices = @transform_0, window_bounds = array<i64: 64, 3>}, {pipeline_mode = #tpu.pipeline_mode<synchronous>, transform_indices = @transform_1, window_bounds = array<i64: 3, 64>}, {transform_indices = @transform_2, window_bounds = array<i64: 64, 64>}, {transform_indices = @transform_3, window_bounds = array<i64: 64, 64>}]} {
    %c0 = arith.constant 0 : index
    %c0_0 = arith.constant 0 : index
    %0 = vector.load %arg1[%c0, %c0_0] : memref<64x3xf32, #tpu.memory_space<vmem>>, vector<64x3xf32>
    %c0_1 = arith.constant 0 : index
    %c0_2 = arith.constant 0 : index
    %1 = vector.load %arg2[%c0_1, %c0_2] : memref<3x64xf32, #tpu.memory_space<vmem>>, vector<3x64xf32>
    %2 = vector.extract_strided_slice %0 {offsets = [0, 0], sizes = [64, 1], strides = [1, 1]} : vector<64x3xf32> to vector<64x1xf32>
    %3 = vector.extract_strided_slice %1 {offsets = [0, 0], sizes = [1, 64], strides = [1, 1]} : vector<3x64xf32> to vector<1x64xf32>
    %4 = vector.broadcast %2 : vector<64x1xf32> to vector<64x64xf32>
    %5 = vector.broadcast %3 : vector<1x64xf32> to vector<64x64xf32>
    %6 = arith.mulf %4, %5 : vector<64x64xf32>
    %7 = vector.extract_strided_slice %0 {offsets = [0, 1], sizes = [64, 1], strides = [1, 1]} : vector<64x3xf32> to vector<64x1xf32>
    %8 = vector.extract_strided_slice %1 {offsets = [1, 0], sizes = [1, 64], strides = [1, 1]} : vector<3x64xf32> to vector<1x64xf32>
    %9 = vector.broadcast %7 : vector<64x1xf32> to vector<64x64xf32>
    %10 = vector.broadcast %8 : vector<1x64xf32> to vector<64x64xf32>
    %11 = arith.mulf %9, %10 : vector<64x64xf32>
    %12 = arith.addf %6, %11 : vector<64x64xf32>
    %13 = vector.extract_strided_slice %0 {offsets = [0, 2], sizes = [64, 1], strides = [1, 1]} : vector<64x3xf32> to vector<64x1xf32>
    %14 = vector.extract_strided_slice %1 {offsets = [2, 0], sizes = [1, 64], strides = [1, 1]} : vector<3x64xf32> to vector<1x64xf32>
    %15 = vector.broadcast %13 : vector<64x1xf32> to vector<64x64xf32>
    %16 = vector.broadcast %14 : vector<1x64xf32> to vector<64x64xf32>
    %17 = arith.mulf %15, %16 : vector<64x64xf32>
    %18 = arith.addf %12, %17 : vector<64x64xf32>
    %cst = arith.constant 0.636619746 : f32
    %19 = vector.broadcast %cst : f32 to vector<64x64xf32>
    %20 = arith.mulf %18, %19 : vector<64x64xf32>
    %cst_3 = arith.constant 5.000000e-01 : f32
    %21 = vector.broadcast %cst_3 : f32 to vector<64x64xf32>
    %22 = arith.addf %20, %21 : vector<64x64xf32>
    %23 = math.floor %22 : vector<64x64xf32>
    %cst_4 = arith.constant 1.57073975 : f32
    %24 = vector.broadcast %cst_4 : f32 to vector<64x64xf32>
    %25 = arith.mulf %23, %24 : vector<64x64xf32>
    %26 = arith.subf %18, %25 : vector<64x64xf32>
    %cst_5 = arith.constant 5.65797091E-5 : f32
    %27 = vector.broadcast %cst_5 : f32 to vector<64x64xf32>
    %28 = arith.mulf %23, %27 : vector<64x64xf32>
    %29 = arith.subf %26, %28 : vector<64x64xf32>
    %cst_6 = arith.constant 9.92093629E-10 : f32
    %30 = vector.broadcast %cst_6 : f32 to vector<64x64xf32>
    %31 = arith.mulf %23, %30 : vector<64x64xf32>
    %32 = arith.subf %29, %31 : vector<64x64xf32>
    %33 = arith.mulf %32, %32 : vector<64x64xf32>
    %34 = arith.mulf %32, %33 : vector<64x64xf32>
    %cst_7 = arith.constant -1.95152956E-4 : f32
    %35 = vector.broadcast %cst_7 : f32 to vector<64x64xf32>
    %36 = arith.mulf %33, %35 : vector<64x64xf32>
    %cst_8 = arith.constant 0.00833216123 : f32
    %37 = vector.broadcast %cst_8 : f32 to vector<64x64xf32>
    %38 = arith.addf %37, %36 : vector<64x64xf32>
    %39 = arith.mulf %33, %38 : vector<64x64xf32>
    %cst_9 = arith.constant -0.166666552 : f32
    %40 = vector.broadcast %cst_9 : f32 to vector<64x64xf32>
    %41 = arith.addf %40, %39 : vector<64x64xf32>
    %42 = arith.mulf %34, %41 : vector<64x64xf32>
    %43 = arith.addf %32, %42 : vector<64x64xf32>
    %cst_10 = arith.constant 5.000000e-01 : f32
    %44 = vector.broadcast %cst_10 : f32 to vector<64x64xf32>
    %45 = arith.mulf %44, %33 : vector<64x64xf32>
    %cst_11 = arith.constant 1.000000e+00 : f32
    %46 = vector.broadcast %cst_11 : f32 to vector<64x64xf32>
    %47 = arith.subf %46, %45 : vector<64x64xf32>
    %48 = arith.mulf %33, %33 : vector<64x64xf32>
    %cst_12 = arith.constant 2.44331568E-5 : f32
    %49 = vector.broadcast %cst_12 : f32 to vector<64x64xf32>
    %50 = arith.mulf %33, %49 : vector<64x64xf32>
    %cst_13 = arith.constant -0.00138873165 : f32
    %51 = vector.broadcast %cst_13 : f32 to vector<64x64xf32>
    %52 = arith.addf %51, %50 : vector<64x64xf32>
    %53 = arith.mulf %33, %52 : vector<64x64xf32>
    %cst_14 = arith.constant 0.0416666456 : f32
    %54 = vector.broadcast %cst_14 : f32 to vector<64x64xf32>
    %55 = arith.addf %54, %53 : vector<64x64xf32>
    %56 = arith.mulf %48, %55 : vector<64x64xf32>
    %57 = arith.addf %47, %56 : vector<64x64xf32>
    %58 = arith.fptosi %23 : vector<64x64xf32> to vector<64x64xi32>
    %c1_i32 = arith.constant 1 : i32
    %59 = vector.broadcast %c1_i32 : i32 to vector<64x64xi32>
    %60 = arith.andi %58, %59 : vector<64x64xi32>
    %c1_i32_15 = arith.constant 1 : i32
    %61 = vector.broadcast %c1_i32_15 : i32 to vector<64x64xi32>
    %62 = arith.cmpi eq, %60, %61 : vector<64x64xi32>
    %63 = arith.select %62, %57, %43 : vector<64x64xi1>, vector<64x64xf32>
    %64 = arith.select %62, %43, %57 : vector<64x64xi1>, vector<64x64xf32>
    %c2_i32 = arith.constant 2 : i32
    %65 = vector.broadcast %c2_i32 : i32 to vector<64x64xi32>
    %66 = arith.andi %58, %65 : vector<64x64xi32>
    %c2_i32_16 = arith.constant 2 : i32
    %67 = vector.broadcast %c2_i32_16 : i32 to vector<64x64xi32>
    %68 = arith.cmpi eq, %66, %67 : vector<64x64xi32>
    %cst_17 = arith.constant 0.000000e+00 : f32
    %69 = vector.broadcast %cst_17 : f32 to vector<64x64xf32>
    %70 = arith.subf %69, %63 : vector<64x64xf32>
    %71 = arith.select %68, %70, %63 : vector<64x64xi1>, vector<64x64xf32>
    %c1_i32_18 = arith.constant 1 : i32
    %72 = vector.broadcast %c1_i32_18 : i32 to vector<64x64xi32>
    %73 = arith.addi %58, %72 : vector<64x64xi32>
    %c2_i32_19 = arith.constant 2 : i32
    %74 = vector.broadcast %c2_i32_19 : i32 to vector<64x64xi32>
    %75 = arith.andi %73, %74 : vector<64x64xi32>
    %c2_i32_20 = arith.constant 2 : i32
    %76 = vector.broadcast %c2_i32_20 : i32 to vector<64x64xi32>
    %77 = arith.cmpi eq, %75, %76 : vector<64x64xi32>
    %cst_21 = arith.constant 0.000000e+00 : f32
    %78 = vector.broadcast %cst_21 : f32 to vector<64x64xf32>
    %79 = arith.subf %78, %64 : vector<64x64xf32>
    %80 = arith.select %77, %79, %64 : vector<64x64xi1>, vector<64x64xf32>
    %c0_22 = arith.constant 0 : index
    %c0_23 = arith.constant 0 : index
    %81 = vector.load %arg3[%c0_22, %c0_23] : memref<64x64xf32, #tpu.memory_space<vmem>>, vector<64x64xf32>
    tpu.vector_store %arg3[%c0_22, %c0_23], %80 {strides = array<i32>} : memref<64x64xf32, #tpu.memory_space<vmem>>, vector<64x64xf32>,
    %c0_24 = arith.constant 0 : index
    %c0_25 = arith.constant 0 : index
    %82 = vector.load %arg4[%c0_24, %c0_25] : memref<64x64xf32, #tpu.memory_space<vmem>>, vector<64x64xf32>
    tpu.vector_store %arg4[%c0_24, %c0_25], %71 {strides = array<i32>} : memref<64x64xf32, #tpu.memory_space<vmem>>, vector<64x64xf32>,
    return
  }
  func.func @transform_0(%arg0: i32) -> (i32, i32) {
    %c0_i32 = arith.constant 0 : i32
    %c0_i32_0 = arith.constant 0 : i32
    return %arg0, %c0_i32 : i32, i32
  }
  func.func @transform_1(%arg0: i32) -> (i32, i32) {
    %c0_i32 = arith.constant 0 : i32
    %c0_i32_0 = arith.constant 0 : i32
    %c0_i32_1 = arith.constant 0 : i32
    return %c0_i32, %c0_i32_0 : i32, i32
  }
  func.func @transform_2(%arg0: i32) -> (i32, i32) {
    %c0_i32 = arith.constant 0 : i32
    %c0_i32_0 = arith.constant 0 : i32
    return %arg0, %c0_i32 : i32, i32
  }
  func.func @transform_3(%arg0: i32) -> (i32, i32) {
    %c0_i32 = arith.constant 0 : i32
    %c0_i32_0 = arith.constant 0 : i32
    return %arg0, %c0_i32 : i32, i32
  }
}

</mosaic_0001>

<bundles_post_ra>
// kernel: tpu_custom_call.1
= control target key start
LH: loop header
LB: loop body
LE: loop exit
PB: predicated region body
PF: predicated region fallthrough
CT: control target
= control target key end

     0   :  { %s857_s12 = smov 0   ;;  %s1075_s0 = inlined_call_operand.vmem [shape: f32[128,3], index: 0, kind: input, shape index: {}]   ;;  %s1076_s1 = inlined_call_operand.vmem [shape: f32[3,64], index: 1, kind: input, shape index: {}]   ;;  %s1077_s2 = inlined_call_operand.vmem [shape: f32[128,64], index: 2, kind: output, shape index: {0}]   ;;  %s1078_s3 = inlined_call_operand.vmem [shape: f32[128,64], index: 3, kind: output, shape index: {1}]  }
   0x1 LB: > { %s780_s13 = sadd.s32 4294967295, %s832_s12   ;;  %p784_p0 = scmp.ge.s32.totalorder %s832_s12, 1  ;;  %s832_s12 = sphi %s857_s12, %s14_s12  }
   0x2   : > { %p141_p1 = scmp.lt.s32.totalorder %s832_s12, 3 }
   0x4   : > { %p142_p2 = pnand %p784_p0, %p141_p1 }
   0x5   : > { %s785_s14 = sshll.u32 (!%p142_p2), %s780_s13, 3 }
   0x6   : > { %145 = sbr.rel (%p142_p2) target bundleno = 270 (0x10e), region = 28  ;;  %p171_p3 = scmp.lt.s32.totalorder (!%p142_p2), %s785_s14, 15 }
   0xb   : > { %v834_v0 = vmov 0   ;;  %s1100_s14 = smov (!%p171_p3, %s785_s14), 15  ;;  %v835_v9 = vmov 1   ;;  %v836_v10 = vmov 2   ;;  %v237_v11 = vlaneseq  ;;  %v196_v18 = vld [vmem:[%s1076_s1] sm:$0x7] }
   0xc   : > { %821 = vset.pattern.permute.xlu1 %v834_v0  ;;  %820 = vset.pattern.permute.xlu0 %v834_v0  ;;  %s865_s15 = sshll.u32 %s1100_s14, 3  ;;  %vm673_vm2 = vcmask 523264  }
   0xd   : > { %s174_s18 = scalar_lea.vmem %s1075_s0, %s865_s15  ;;  %v238_v14 = vshrl.u32 %v237_v11, 7  ;;  %s973_s23 = scalar_lea.vmem %s1077_s2, %s865_s15 }
   0xe   : > { %v190_v1 = vld [vmem:[%s174_s18 + $0x10] sm:$0xff]  ;;  %v188_v2 = vld [vmem:[%s174_s18] sm:$0xff]  ;;  %v191_v3 = vld [vmem:[%s174_s18 + $0x18] sm:$0xff]  ;;  %s979_s26 = scalar_lea.vmem %s1078_s3, %s865_s15 }
   0xf   : > { %209 = vperm.xlu1 %821, %v190_v1   ;;  %199 = vperm.xlu0 %820, %v188_v2   ;;  %v189_v4 = vld [vmem:[%s174_s18 + $0x8] sm:$0xff]  ;;  %v192_v6 = vld [vmem:[%s174_s18 + $0x20] sm:$0xff]  ;;  %v195_v7 = vld [vmem:[%s174_s18 + $0x38] sm:$0xff]  ;;  %v239_v17 = vsub.s32 0, %v238_v14  ;;  %v283_v29 = vsub.s32 1, %v238_v14  ;;  %v335_v33 = vsub.s32 2, %v238_v14 }
  0x10   : > { %v193_v5 = vld [vmem:[%s174_s18 + $0x28] sm:$0xff]  ;;  %v194_v8 = vld [vmem:[%s174_s18 + $0x30] sm:$0xff] }
  0x11   : > { %v876_v21 = vrot.slane %v196_v18, %v239_v17  ;;  %v883_v32 = vrot.slane %v196_v18, %v283_v29  ;;  %v888_v39 = vrot.slane %v196_v18, %v335_v33 }
  0x13   : > { %214 = vperm.xlu1 %821, %v191_v3   ;;  %204 = vperm.xlu0 %820, %v189_v4  }
  0x17   : > { %224 = vperm.xlu1 %821, %v193_v5   ;;  %219 = vperm.xlu0 %820, %v192_v6  }
  0x1b   : > { %234 = vperm.xlu1 %821, %v195_v7   ;;  %229 = vperm.xlu0 %820, %v194_v8  }
  0x1f   : > { %823 = vset.pattern.permute.xlu1 %v835_v9  ;;  %822 = vset.pattern.permute.xlu0 %v835_v9 }
  0x20   : > { %254 = vperm.xlu1 %823, %v189_v4   ;;  %250 = vperm.xlu0 %822, %v188_v2  }
  0x24   : > { %258 = vperm.xlu1 %823, %v190_v1   ;;  %262 = vperm.xlu0 %822, %v191_v3  }
  0x28   : > { %266 = vperm.xlu1 %823, %v192_v6   ;;  %270 = vperm.xlu0 %822, %v193_v5  }
  0x2c   : > { %274 = vperm.xlu1 %823, %v194_v8   ;;  %278 = vperm.xlu0 %822, %v195_v7  }
  0x30   : > { %824 = vset.pattern.permute.xlu1 %v836_v10  ;;  %825 = vset.pattern.permute.xlu0 %v836_v10 }
  0x31   : > { %302 = vperm.xlu1 %824, %v188_v2   ;;  %306 = vperm.xlu0 %825, %v189_v4  }
  0x35   : > { %310 = vperm.xlu1 %824, %v190_v1   ;;  %318 = vperm.xlu0 %825, %v192_v6  }
  0x39   : > { %314 = vperm.xlu1 %824, %v191_v3   ;;  %326 = vperm.xlu0 %825, %v194_v8  }
  0x3d   : > { %322 = vperm.xlu1 %824, %v193_v5  }
  0x41   : > { %330 = vperm.xlu1 %824, %v195_v7  }
  0x8a   : > { %v210_v12 = vpop.permute.xlu1 %209  ;;  %v200_v13 = vpop.permute.xlu0 %199 }
  0x8b   : > { %v241_v41 = vmul.f32 %v876_v21, %v200_v13  ;;  %v243_v55 = vmul.f32 %v876_v21, %v210_v12 }
  0x8e   : > { %v215_v15 = vpop.permute.xlu1 %214  ;;  %v205_v16 = vpop.permute.xlu0 %204 }
  0x8f   : > { %v242_v42 = vmul.f32 %v876_v21, %v205_v16  ;;  %v244_v7 = vmul.f32 %v876_v21, %v215_v15 }
  0x92   : > { %v874_v19 = vpop.permute.xlu1 %224  ;;  %v220_v20 = vpop.permute.xlu0 %219 }
  0x93   : > { %v245_v59 = vmul.f32 %v876_v21, %v220_v20 }
  0x96   : > { %v235_v22 = vpop.permute.xlu1 %234  ;;  %v878_v23 = vpop.permute.xlu0 %229 }
  0x97   : > { %v248_v24 = vmul.f32 %v876_v21, %v235_v22 }
  0x9b   : > { %v255_v25 = vpop.permute.xlu1 %254  ;;  %v251_v26 = vpop.permute.xlu0 %250 }
  0x9c   : > { %v286_v37 = vmul.f32 %v883_v32, %v255_v25  ;;  %v285_v38 = vmul.f32 %v883_v32, %v251_v26 }
  0x9e   : > { %v294_v45 = vadd.f32 %v286_v37, %v242_v42  ;;  %v293_v46 = vadd.f32 %v285_v38, %v241_v41 }
  0x9f   : > { %v259_v27 = vpop.permute.xlu1 %258  ;;  %v263_v28 = vpop.permute.xlu0 %262 }
  0xa0   : > { %v287_v49 = vmul.f32 %v883_v32, %v259_v27  ;;  %v288_v8 = vmul.f32 %v883_v32, %v263_v28  ;;  %v247_v28 = vmul.f32 %v876_v21, %v878_v23 }
  0xa2   : > { %v295_v61 = vadd.f32 %v287_v49, %v243_v55 }
  0xa3   : > { %v267_v30 = vpop.permute.xlu1 %266  ;;  %v881_v31 = vpop.permute.xlu0 %270 }
  0xa4   : > { %v289_v52 = vmul.f32 %v883_v32, %v267_v30 }
  0xa6   : > { %v297_v0 = vadd.f32 %v289_v52, %v245_v59 }
  0xa7   : > { %v275_v34 = vpop.permute.xlu1 %274  ;;  %v279_v35 = vpop.permute.xlu0 %278 }
  0xa8   : > { %v292_v36 = vmul.f32 %v883_v32, %v279_v35  ;;  %v291_v12 = vmul.f32 %v883_v32, %v275_v34  ;;  %v917_v34 = vmul.f32 %v876_v21, %v874_v19  ;;  %v296_v35 = vadd.f32 %v288_v8, %v244_v7 }
  0xaa   : > { %v890_v40 = vadd.f32 %v292_v36, %v248_v24  ;;  %v299_v38 = vadd.f32 %v291_v12, %v247_v28 }
  0xac   : > { %v303_v43 = vpop.permute.xlu1 %302  ;;  %v307_v44 = vpop.permute.xlu0 %306 }
  0xad   : > { %v337_v47 = vmul.f32 %v888_v39, %v303_v43  ;;  %v338_v48 = vmul.f32 %v888_v39, %v307_v44  ;;  %v923_v44 = vmul.f32 %v883_v32, %v881_v31 }
  0xaf   : > { %v345_v50 = vadd.f32 %v337_v47, %v293_v46  ;;  %v346_v51 = vadd.f32 %v338_v48, %v294_v45 }
  0xb0   : > { %v311_v53 = vpop.permute.xlu1 %310  ;;  %v319_v54 = vpop.permute.xlu0 %318 }
  0xb1   : > { %v353_v56 = vmul.f32 0.63661975, %v345_v50  ;;  %v354_v57 = vmul.f32 0.63661975, %v346_v51  ;;  %v339_v58 = vmul.f32 %v888_v39, %v311_v53  ;;  %v341_v60 = vmul.f32 %v888_v39, %v319_v54 }
  0xb3   : > { %v361_v62 = vadd.f32 0.5, %v353_v56  ;;  %v362_v63 = vadd.f32 0.5, %v354_v57  ;;  %v902_v3 = vadd.f32 %v339_v58, %v295_v61  ;;  %v904_v4 = vadd.f32 %v341_v60, %v297_v0 }
  0xb4   : > { %v315_v11 = vpop.permute.xlu1 %314  ;;  %v327_v17 = vpop.permute.xlu0 %326 }
  0xb5   : > { %v369_v1 = vfloor.f32 %v361_v62  ;;  %v370_v2 = vfloor.f32 %v362_v63  ;;  %v355_v16 = vmul.f32 0.63661975, %v902_v3  ;;  %v357_v24 = vmul.f32 0.63661975, %v904_v4 }
  0xb6   : > { %v340_v27 = vmul.f32 %v888_v39, %v315_v11  ;;  %v343_v33 = vmul.f32 %v888_v39, %v327_v17 }
  0xb7   : > { %v377_v5 = vmul.f32 1.5707397, %v369_v1  ;;  %v793_v6 = vtrunc.f32 %v369_v1  ;;  %v378_v9 = vmul.f32 1.5707397, %v370_v2  ;;  %v795_v10 = vtrunc.f32 %v370_v2 }
  0xb8   : > { %v393_v14 = vmul.f32 5.657971e-05, %v369_v1  ;;  %v394_v22 = vmul.f32 5.657971e-05, %v370_v2  ;;  %v409_v26 = vmul.f32 9.920936e-10, %v369_v1  ;;  %v410_v30 = vmul.f32 9.920936e-10, %v370_v2 }
  0xb9   : > { %v385_v13 = vsub.f32 %v345_v50, %v377_v5  ;;  %v794_v18 = vcvt.f32.s32 %v793_v6  ;;  %v386_v20 = vsub.f32 %v346_v51, %v378_v9  ;;  %v796_v15 = vcvt.f32.s32 %v795_v10 }
  0xba   : > { %v363_v37 = vadd.f32 0.5, %v355_v16  ;;  %v365_v43 = vadd.f32 0.5, %v357_v24  ;;  %v925_v46 = vadd.f32 %v340_v27, %v296_v35  ;;  %v927_v21 = vadd.f32 %v343_v33, %v299_v38 }
  0xbb   : > { %v401_v25 = vsub.f32 %v385_v13, %v393_v14  ;;  %v402_v29 = vsub.f32 %v386_v20, %v394_v22  ;;  %v919_v41 = vadd.s32 1, %v794_v18  ;;  %v634_v45 = vadd.s32 1, %v796_v15 }
  0xbc   : > { %v569_v47 = vand.u32 1, %v794_v18  ;;  %v601_v48 = vand.u32 2, %v794_v18  ;;  %v570_v50 = vand.u32 1, %v796_v15  ;;  %v602_v51 = vand.u32 2, %v796_v15 }
  0xbd   : > { %v417_v36 = vsub.f32 %v401_v25, %v409_v26  ;;  %v418_v42 = vsub.f32 %v402_v29, %v410_v30  ;;  %v371_v52 = vfloor.f32 %v363_v37  ;;  %v641_v54 = vand.u32 2, %v919_v41 }
  0xbe   : > { %v930_v56 = vfloor.f32 %v365_v43  ;;  %v642_v58 = vand.u32 2, %v634_v45  ;;  %vm932_vm0 = vcmp.eq.s32.totalorder %v569_v47, 1  ;;  %vm936_vm1 = vcmp.eq.s32.totalorder %v570_v50, 1 }
  0xbf   : > { %v425_v23 = vmul.f32 %v417_v36, %v417_v36  ;;  %v426_v19 = vmul.f32 %v418_v42, %v418_v42  ;;  %v379_v5 = vmul.f32 1.5707397, %v371_v52  ;;  %v395_v14 = vmul.f32 5.657971e-05, %v371_v52 }
  0xc0   : > { %v381_v10 = vmul.f32 1.5707397, %v930_v56  ;;  %vm942_vm3 = vcmp.eq.s32.totalorder %v601_v48, 2  ;;  %vm946_vm4 = vcmp.eq.s32.totalorder %v602_v51, 2  ;;  %v411_v27 = vmul.f32 9.920936e-10, %v371_v52 }
  0xc1   : > { %v441_v49 = vmul.f32 -0.00019515296, %v425_v23  ;;  %v513_v53 = vmul.f32 2.4433157e-05, %v425_v23  ;;  %v442_v55 = vmul.f32 -0.00019515296, %v426_v19  ;;  %v433_v31 = vmul.f32 %v425_v23, %v417_v36 }
  0xc2   : > { %v514_v57 = vmul.f32 2.4433157e-05, %v426_v19  ;;  %v489_v59 = vmul.f32 0.5, %v425_v23  ;;  %v505_v60 = vmul.f32 %v425_v23, %v425_v23  ;;  %v434_v1 = vmul.f32 %v426_v19, %v418_v42 }
  0xc3   : > { %v449_v32 = vadd.f32 0.008332161, %v441_v49  ;;  %v521_v61 = vadd.f32 -0.0013887316, %v513_v53  ;;  %v450_v62 = vadd.f32 0.008332161, %v442_v55  ;;  %v387_v13 = vsub.f32 %v902_v3, %v379_v5 }
  0xc4   : > { %v522_v2 = vadd.f32 -0.0013887316, %v514_v57  ;;  %v490_v8 = vmul.f32 0.5, %v426_v19  ;;  %v497_v16 = vsub.f32 1.0, %v489_v59  ;;  %v506_v22 = vmul.f32 %v426_v19, %v426_v19 }
  0xc5   : > { %v457_v63 = vmul.f32 %v449_v32, %v425_v23  ;;  %v529_v6 = vmul.f32 %v521_v61, %v425_v23  ;;  %v458_v7 = vmul.f32 %v450_v62, %v426_v19  ;;  %v403_v15 = vsub.f32 %v387_v13, %v395_v14 }
  0xc6   : > { %v530_v12 = vmul.f32 %v522_v2, %v426_v19  ;;  %v797_v3 = vtrunc.f32 %v371_v52  ;;  %v389_v30 = vsub.f32 %v904_v4, %v381_v10  ;;  %v498_v35 = vsub.f32 1.0, %v490_v8  ;;  %v323_v4 = vpop.permute.xlu1 %322 }
  0xc7   : > { %v465_v11 = vadd.f32 -0.16666655, %v457_v63  ;;  %v537_v17 = vadd.f32 0.041666646, %v529_v6  ;;  %v466_v20 = vadd.f32 -0.16666655, %v458_v7  ;;  %v951_v38 = vsub.f32 %v403_v15, %v411_v27 }
  0xc8   : > { %v538_v25 = vadd.f32 0.041666646, %v530_v12  ;;  %v397_v23 = vmul.f32 5.657971e-05, %v930_v56  ;;  %v356_v45 = vmul.f32 0.63661975, %v925_v46  ;;  %vm955_vm5 = vcmp.eq.s32.totalorder %v641_v54, 2 }
  0xc9   : > { %v473_v24 = vmul.f32 %v465_v11, %v433_v31  ;;  %v545_v28 = vmul.f32 %v537_v17, %v505_v60  ;;  %v474_v29 = vmul.f32 %v466_v20, %v434_v1  ;;  %vm959_vm6 = vcmp.eq.s32.totalorder %v642_v58, 2 }
  0xca   : > { %v546_v37 = vmul.f32 %v538_v25, %v506_v22  ;;  %v798_v49 = vcvt.f32.s32 %v797_v3  ;;  %v405_v50 = vsub.f32 %v389_v30, %v397_v23  ;;  %v364_v57 = vadd.f32 0.5, %v356_v45 }
  0xcb   : > { %v481_v33 = vadd.f32 %v473_v24, %v417_v36  ;;  %v553_v41 = vadd.f32 %v545_v28, %v497_v16  ;;  %v482_v43 = vadd.f32 %v474_v29, %v418_v42  ;;  %v427_v36 = vmul.f32 %v951_v38, %v951_v38 }
  0xcc   : > { %v554_v48 = vadd.f32 %v546_v37, %v498_v35  ;;  %v413_v60 = vmul.f32 9.920936e-10, %v930_v56  ;;  %v801_v61 = vtrunc.f32 %v930_v56  ;;  %v571_v2 = vand.u32 1, %v798_v49 }
  0xcd   : > { %v585_v19 = vsel %vm932_vm0, %v553_v41, %v481_v33  ;;  %v593_v42 = vsel %vm932_vm0, %v481_v33, %v553_v41  ;;  %v443_v32 = vmul.f32 -0.00019515296, %v427_v36  ;;  %v515_v1 = vmul.f32 2.4433157e-05, %v427_v36 }
  0xce   : > { %v617_v51 = vsub.f32 0.0, %v585_v19  ;;  %v657_v52 = vsub.f32 0.0, %v593_v42  ;;  %v586_v53 = vsel %vm936_vm1, %v554_v48, %v482_v43  ;;  %v594_v54 = vsel %vm936_vm1, %v482_v43, %v554_v48 }
  0xcf   : > { %v618_v55 = vsub.f32 0.0, %v586_v53  ;;  %v658_v31 = vsub.f32 0.0, %v594_v54  ;;  %v451_v0 = vadd.f32 0.008332161, %v443_v32  ;;  %v603_v5 = vand.u32 2, %v798_v49 }
  0xd0   : > { %v625_v58 = vsel %vm942_vm3, %v617_v51, %v585_v19  ;;  %v665_v59 = vsel %vm955_vm5, %v657_v52, %v593_v42  ;;  %v635_v6 = vadd.s32 1, %v798_v49  ;;  %v421_v56 = vsub.f32 %v405_v50, %v413_v60 }
  0xd1   : > { %674 = vst.msk [vmem:[%s973_s23] sm:$0xff] %vm673_vm2, %v665_v59  ;;  %682 = vst.msk [vmem:[%s979_s26] sm:$0xff] %vm673_vm2, %v625_v58  ;;  %v626_v62 = vsel %vm946_vm4, %v618_v55, %v586_v53  ;;  %v666_v63 = vsel %vm959_vm6, %v658_v31, %v594_v54  ;;  %v459_v7 = vmul.f32 %v451_v0, %v427_v36  ;;  %v491_v8 = vmul.f32 0.5, %v427_v36 }
  0xd2   : > { %675 = vst.msk [vmem:[%s973_s23 + $0x8] sm:$0xff] %vm673_vm2, %v666_v63  ;;  %683 = vst.msk [vmem:[%s979_s26 + $0x8] sm:$0xff] %vm673_vm2, %v626_v62  ;;  %v523_v9 = vadd.f32 -0.0013887316, %v515_v1  ;;  %v372_v10 = vfloor.f32 %v364_v57  ;;  %v1005_v11 = vadd.f32 %v923_v44, %v917_v34  ;;  %v429_v12 = vmul.f32 %v421_v56, %v421_v56 }
  0xd3   : > { %v802_v13 = vcvt.f32.s32 %v801_v61  ;;  %v359_v14 = vmul.f32 0.63661975, %v927_v21  ;;  %v435_v16 = vmul.f32 %v427_v36, %v951_v38  ;;  %v467_v17 = vadd.f32 -0.16666655, %v459_v7 }
  0xd4   : > { %v531_v18 = vmul.f32 %v523_v9, %v427_v36  ;;  %v380_v20 = vmul.f32 1.5707397, %v372_v10  ;;  %v507_v22 = vmul.f32 %v427_v36, %v427_v36  ;;  %vm1009_vm7 = vcmp.eq.s32.totalorder %v571_v2, 1  ;;  %v331_v2 = vpop.permute.xlu1 %330 }
  0xd5   : > { %v643_v25 = vand.u32 2, %v635_v6  ;;  %v445_v26 = vmul.f32 -0.00019515296, %v429_v12  ;;  %v475_v15 = vmul.f32 %v467_v17, %v435_v16  ;;  %v499_v27 = vsub.f32 1.0, %v491_v8 }
  0xd6   : > { %v539_v34 = vadd.f32 0.041666646, %v531_v18  ;;  %vm1013_vm8 = vcmp.eq.s32.totalorder %v603_v5, 2  ;;  %v517_v28 = vmul.f32 2.4433157e-05, %v429_v12  ;;  %v573_v3 = vand.u32 1, %v802_v13 }
  0xd7   : > { %v453_v29 = vadd.f32 0.008332161, %v445_v26  ;;  %v396_v30 = vmul.f32 5.657971e-05, %v372_v10  ;;  %v367_v33 = vadd.f32 0.5, %v359_v14  ;;  %v483_v35 = vadd.f32 %v475_v15, %v951_v38 }
  0xd8   : > { %v547_v37 = vmul.f32 %v539_v34, %v507_v22  ;;  %v525_v41 = vadd.f32 -0.0013887316, %v517_v28  ;;  %v388_v43 = vsub.f32 %v925_v46, %v380_v20  ;;  %v493_v45 = vmul.f32 0.5, %v429_v12 }
  0xd9   : > { %v461_v23 = vmul.f32 %v453_v29, %v429_v12  ;;  %v605_v47 = vand.u32 2, %v802_v13  ;;  %v637_v48 = vadd.s32 1, %v802_v13  ;;  %v412_v49 = vmul.f32 9.920936e-10, %v372_v10 }
  0xda   : > { %v555_v36 = vadd.f32 %v547_v37, %v499_v27  ;;  %v533_v19 = vmul.f32 %v525_v41, %v429_v12  ;;  %v404_v42 = vsub.f32 %v388_v43, %v396_v30  ;;  %v437_v50 = vmul.f32 %v429_v12, %v421_v56 }
  0xdb   : > { %v469_v51 = vadd.f32 -0.16666655, %v461_v23  ;;  %v509_v52 = vmul.f32 %v429_v12, %v429_v12  ;;  %v799_v53 = vtrunc.f32 %v372_v10  ;;  %v645_v58 = vand.u32 2, %v637_v48 }
  0xdc   : > { %v587_v38 = vsel %vm1009_vm7, %v555_v36, %v483_v35  ;;  %v595_v54 = vsel %vm1009_vm7, %v483_v35, %v555_v36  ;;  %v541_v46 = vadd.f32 0.041666646, %v533_v19  ;;  %v420_v55 = vsub.f32 %v404_v42, %v412_v49 }
  0xdd   : > { %v619_v31 = vsub.f32 0.0, %v587_v38  ;;  %v659_v32 = vsub.f32 0.0, %v595_v54  ;;  %v477_v57 = vmul.f32 %v469_v51, %v437_v50  ;;  %vm651_vm9 = vcmp.eq.s32.totalorder %v643_v25, 2 }
  0xde   : > { %v501_v59 = vsub.f32 1.0, %v493_v45  ;;  %v549_v60 = vmul.f32 %v541_v46, %v509_v52  ;;  %v428_v61 = vmul.f32 %v420_v55, %v420_v55  ;;  %v800_v1 = vcvt.f32.s32 %v799_v53 }
  0xdf   : > { %v627_v62 = vsel %vm1013_vm8, %v619_v31, %v587_v38  ;;  %v667_v63 = vsel %vm651_vm9, %v659_v32, %v595_v54  ;;  %v485_v0 = vadd.f32 %v477_v57, %v421_v56  ;;  %vm581_vm10 = vcmp.eq.s32.totalorder %v573_v3, 1 }
  0xe0   : > { %676 = vst.msk [vmem:[%s973_s23 + $0x10] sm:$0xff] %vm673_vm2, %v667_v63  ;;  %684 = vst.msk [vmem:[%s979_s26 + $0x10] sm:$0xff] %vm673_vm2, %v627_v62  ;;  %v557_v5 = vadd.f32 %v549_v60, %v501_v59  ;;  %v444_v6 = vmul.f32 -0.00019515296, %v428_v61  ;;  %v375_v7 = vfloor.f32 %v367_v33  ;;  %vm1029_vm11 = vcmp.eq.s32.totalorder %v605_v47, 2 }
  0xe1   : > { %vm1033_vm12 = vcmp.eq.s32.totalorder %v645_v58, 2  ;;  %v516_v10 = vmul.f32 2.4433157e-05, %v428_v61  ;;  %v342_v56 = vmul.f32 %v888_v39, %v323_v4  ;;  %v344_v16 = vmul.f32 %v888_v39, %v331_v2 }
  0xe2   : > { %v589_v12 = vsel %vm581_vm10, %v557_v5, %v485_v0  ;;  %v597_v13 = vsel %vm581_vm10, %v485_v0, %v557_v5  ;;  %v452_v14 = vadd.f32 0.008332161, %v444_v6  ;;  %v572_v22 = vand.u32 1, %v800_v1 }
  0xe3   : > { %v621_v17 = vsub.f32 0.0, %v589_v12  ;;  %v661_v18 = vsub.f32 0.0, %v597_v13  ;;  %v524_v20 = vadd.f32 -0.0013887316, %v516_v10  ;;  %v436_v24 = vmul.f32 %v428_v61, %v420_v55 }
  0xe4   : > { %v460_v25 = vmul.f32 %v452_v14, %v428_v61  ;;  %v492_v26 = vmul.f32 0.5, %v428_v61  ;;  %v383_v15 = vmul.f32 1.5707397, %v375_v7  ;;  %v399_v28 = vmul.f32 5.657971e-05, %v375_v7 }
  0xe5   : > { %v629_v27 = vsel %vm1029_vm11, %v621_v17, %v589_v12  ;;  %v669_v34 = vsel %vm1033_vm12, %v661_v18, %v597_v13  ;;  %v532_v44 = vmul.f32 %v524_v20, %v428_v61  ;;  %v350_v3 = vadd.f32 %v342_v56, %v1005_v11 }
  0xe6   : > { %678 = vst.msk [vmem:[%s973_s23 + $0x20] sm:$0xff] %vm673_vm2, %v669_v34  ;;  %686 = vst.msk [vmem:[%s979_s26 + $0x20] sm:$0xff] %vm673_vm2, %v629_v27  ;;  %v468_v39 = vadd.f32 -0.16666655, %v460_v25  ;;  %v391_v29 = vsub.f32 %v927_v21, %v383_v15  ;;  %v352_v30 = vadd.f32 %v344_v16, %v890_v40  ;;  %v508_v33 = vmul.f32 %v428_v61, %v428_v61 }
  0xe7   : > { %v540_v35 = vadd.f32 0.041666646, %v532_v44  ;;  %v636_v37 = vadd.s32 1, %v800_v1  ;;  %v415_v41 = vmul.f32 9.920936e-10, %v375_v7  ;;  %v500_v48 = vsub.f32 1.0, %v492_v26 }
  0xe8   : > { %v476_v43 = vmul.f32 %v468_v39, %v436_v24  ;;  %v407_v23 = vsub.f32 %v391_v29, %v399_v28  ;;  %v358_v45 = vmul.f32 0.63661975, %v350_v3  ;;  %v360_v47 = vmul.f32 0.63661975, %v352_v30 }
  0xe9   : > { %v548_v4 = vmul.f32 %v540_v35, %v508_v33  ;;  %v604_v21 = vand.u32 2, %v800_v1  ;;  %v644_v51 = vand.u32 2, %v636_v37  ;;  %vm580_vm13 = vcmp.eq.s32.totalorder %v572_v22, 1 }
  0xea   : > { %v484_v36 = vadd.f32 %v476_v43, %v420_v55  ;;  %v423_v19 = vsub.f32 %v407_v23, %v415_v41  ;;  %v366_v42 = vadd.f32 0.5, %v358_v45  ;;  %v368_v49 = vadd.f32 0.5, %v360_v47 }
  0xeb   : > { %v556_v50 = vadd.f32 %v548_v4, %v500_v48  ;;  %v805_v40 = vtrunc.f32 %v375_v7  ;;  %vm612_vm14 = vcmp.eq.s32.totalorder %v604_v21, 2  ;;  %vm652_vm15 = vcmp.eq.s32.totalorder %v644_v51, 2 }
  0xec   : > { %v431_v11 = vmul.f32 %v423_v19, %v423_v19  ;;  %v374_v52 = vfloor.f32 %v366_v42  ;;  %v1050_v32 = vfloor.f32 %v368_v49 }
  0xed   : > { %v588_v53 = vsel %vm580_vm13, %v556_v50, %v484_v36  ;;  %v596_v38 = vsel %vm580_vm13, %v484_v36, %v556_v50  ;;  %v806_v61 = vcvt.f32.s32 %v805_v40 }
  0xee   : > { %v620_v54 = vsub.f32 0.0, %v588_v53  ;;  %v660_v46 = vsub.f32 0.0, %v596_v38  ;;  %v447_v31 = vmul.f32 -0.00019515296, %v431_v11  ;;  %v519_v55 = vmul.f32 2.4433157e-05, %v431_v11 }
  0xef   : > { %v382_v57 = vmul.f32 1.5707397, %v374_v52  ;;  %v398_v0 = vmul.f32 5.657971e-05, %v374_v52  ;;  %v495_v2 = vmul.f32 0.5, %v431_v11  ;;  %v384_v5 = vmul.f32 1.5707397, %v1050_v32 }
  0xf0   : > { %v628_v58 = vsel %vm612_vm14, %v620_v54, %v588_v53  ;;  %v668_v59 = vsel %vm652_vm15, %v660_v46, %v596_v38  ;;  %v455_v60 = vadd.f32 0.008332161, %v447_v31  ;;  %v527_v62 = vadd.f32 -0.0013887316, %v519_v55 }
  0xf1   : > { %677 = vst.msk [vmem:[%s973_s23 + $0x18] sm:$0xff] %vm673_vm2, %v668_v59  ;;  %685 = vst.msk [vmem:[%s979_s26 + $0x18] sm:$0xff] %vm673_vm2, %v628_v58  ;;  %v390_v63 = vsub.f32 %v350_v3, %v382_v57  ;;  %v414_v8 = vmul.f32 9.920936e-10, %v374_v52  ;;  %v439_v9 = vmul.f32 %v431_v11, %v423_v19  ;;  %v639_v56 = vadd.s32 1, %v806_v61 }
  0xf2   : > { %v463_v1 = vmul.f32 %v455_v60, %v431_v11  ;;  %v535_v6 = vmul.f32 %v527_v62, %v431_v11  ;;  %v392_v12 = vsub.f32 %v352_v30, %v384_v5  ;;  %v511_v13 = vmul.f32 %v431_v11, %v431_v11 }
  0xf3   : > { %v406_v7 = vsub.f32 %v390_v63, %v398_v0  ;;  %v400_v17 = vmul.f32 5.657971e-05, %v1050_v32  ;;  %v503_v20 = vsub.f32 1.0, %v495_v2  ;;  %v575_v22 = vand.u32 1, %v806_v61 }
  0xf4   : > { %v471_v10 = vadd.f32 -0.16666655, %v463_v1  ;;  %v543_v14 = vadd.f32 0.041666646, %v535_v6  ;;  %v803_v26 = vtrunc.f32 %v374_v52  ;;  %v416_v34 = vmul.f32 9.920936e-10, %v1050_v32 }
  0xf5   : > { %v422_v16 = vsub.f32 %v406_v7, %v414_v8  ;;  %v408_v15 = vsub.f32 %v392_v12, %v400_v17  ;;  %v607_v28 = vand.u32 2, %v806_v61  ;;  %v647_v39 = vand.u32 2, %v639_v56 }
  0xf6   : > { %v479_v18 = vmul.f32 %v471_v10, %v439_v9  ;;  %v551_v24 = vmul.f32 %v543_v14, %v511_v13  ;;  %vm583_vm0 = vcmp.eq.s32.totalorder %v575_v22, 1  ;;  %v804_v41 = vcvt.f32.s32 %v803_v26 }
  0xf7   : > { %v430_v25 = vmul.f32 %v422_v16, %v422_v16  ;;  %v424_v30 = vsub.f32 %v408_v15, %v416_v34  ;;  %vm615_vm1 = vcmp.eq.s32.totalorder %v607_v28, 2  ;;  %vm655_vm3 = vcmp.eq.s32.totalorder %v647_v39, 2 }
  0xf8   : > { %v487_v27 = vadd.f32 %v479_v18, %v423_v19  ;;  %v559_v44 = vadd.f32 %v551_v24, %v503_v20  ;;  %v807_v4 = vtrunc.f32 %v1050_v32  ;;  %v638_v52 = vadd.s32 1, %v804_v41 }
  0xf9   : > { %v446_v29 = vmul.f32 -0.00019515296, %v430_v25  ;;  %v518_v3 = vmul.f32 2.4433157e-05, %v430_v25  ;;  %v432_v47 = vmul.f32 %v424_v30, %v424_v30  ;;  %v494_v42 = vmul.f32 0.5, %v430_v25 }
  0xfa   : > { %v591_v33 = vsel %vm583_vm0, %v559_v44, %v487_v27  ;;  %v599_v35 = vsel %vm583_vm0, %v487_v27, %v559_v44  ;;  %v438_v50 = vmul.f32 %v430_v25, %v422_v16  ;;  %v510_v11 = vmul.f32 %v430_v25, %v430_v25 }
  0xfb   : > { %v454_v37 = vadd.f32 0.008332161, %v446_v29  ;;  %v623_v43 = vsub.f32 0.0, %v591_v33  ;;  %v663_v23 = vsub.f32 0.0, %v599_v35  ;;  %v526_v45 = vadd.f32 -0.0013887316, %v518_v3 }
  0xfc   : > { %v448_v51 = vmul.f32 -0.00019515296, %v432_v47  ;;  %v520_v53 = vmul.f32 2.4433157e-05, %v432_v47  ;;  %v574_v54 = vand.u32 1, %v804_v41  ;;  %v808_v31 = vcvt.f32.s32 %v807_v4 }
  0xfd   : > { %v462_v48 = vmul.f32 %v454_v37, %v430_v25  ;;  %v631_v36 = vsel %vm615_vm1, %v623_v43, %v591_v33  ;;  %v671_v19 = vsel %vm655_vm3, %v663_v23, %v599_v35  ;;  %v534_v49 = vmul.f32 %v526_v45, %v430_v25 }
  0xfe   : > { %680 = vst.msk [vmem:[%s973_s23 + $0x30] sm:$0xff] %vm673_vm2, %v671_v19  ;;  %688 = vst.msk [vmem:[%s979_s26 + $0x30] sm:$0xff] %vm673_vm2, %v631_v36  ;;  %v456_v46 = vadd.f32 0.008332161, %v448_v51  ;;  %v502_v32 = vsub.f32 1.0, %v494_v42  ;;  %v606_v59 = vand.u32 2, %v804_v41  ;;  %v440_v1 = vmul.f32 %v432_v47, %v424_v30 }
  0xff   : > { %v470_v21 = vadd.f32 -0.16666655, %v462_v48  ;;  %v542_v40 = vadd.f32 0.041666646, %v534_v49  ;;  %v528_v57 = vadd.f32 -0.0013887316, %v520_v53  ;;  %v512_v8 = vmul.f32 %v432_v47, %v432_v47 }
 0x100   : > { %v464_v60 = vmul.f32 %v456_v46, %v432_v47  ;;  %v646_v62 = vand.u32 2, %v638_v52  ;;  %v496_v63 = vmul.f32 0.5, %v432_v47  ;;  %vm582_vm4 = vcmp.eq.s32.totalorder %v574_v54, 1 }
 0x101   : > { %v478_v38 = vmul.f32 %v470_v21, %v438_v50  ;;  %v550_v55 = vmul.f32 %v542_v40, %v510_v11  ;;  %v536_v0 = vmul.f32 %v528_v57, %v432_v47  ;;  %v640_v5 = vadd.s32 1, %v808_v31 }
 0x102   : > { %v472_v2 = vadd.f32 -0.16666655, %v464_v60  ;;  %v576_v13 = vand.u32 1, %v808_v31  ;;  %vm614_vm5 = vcmp.eq.s32.totalorder %v606_v59, 2  ;;  %vm654_vm6 = vcmp.eq.s32.totalorder %v646_v62, 2 }
 0x103   : > { %v486_v58 = vadd.f32 %v478_v38, %v422_v16  ;;  %v558_v61 = vadd.f32 %v550_v55, %v502_v32  ;;  %v544_v9 = vadd.f32 0.041666646, %v536_v0  ;;  %v504_v14 = vsub.f32 1.0, %v496_v63 }
 0x104   : > { %v480_v12 = vmul.f32 %v472_v2, %v440_v1  ;;  %v608_v24 = vand.u32 2, %v808_v31  ;;  %v648_v25 = vand.u32 2, %v640_v5  ;;  %vm584_vm7 = vcmp.eq.s32.totalorder %v576_v13, 1 }
 0x105   : > { %v590_v6 = vsel %vm582_vm4, %v558_v61, %v486_v58  ;;  %v598_v7 = vsel %vm582_vm4, %v486_v58, %v558_v61  ;;  %v552_v16 = vmul.f32 %v544_v9, %v512_v8 }
 0x106   : > { %v622_v10 = vsub.f32 0.0, %v590_v6  ;;  %v662_v56 = vsub.f32 0.0, %v598_v7  ;;  %v488_v20 = vadd.f32 %v480_v12, %v424_v30  ;;  %vm616_vm8 = vcmp.eq.s32.totalorder %v608_v24, 2 }
 0x107   : > { %v560_v22 = vadd.f32 %v552_v16, %v504_v14  ;;  %vm656_vm9 = vcmp.eq.s32.totalorder %v648_v25, 2 }
 0x108   : > { %v630_v17 = vsel %vm614_vm5, %v622_v10, %v590_v6  ;;  %v670_v18 = vsel %vm654_vm6, %v662_v56, %v598_v7 }
 0x109   : > { %679 = vst.msk [vmem:[%s973_s23 + $0x28] sm:$0xff] %vm673_vm2, %v670_v18  ;;  %687 = vst.msk [vmem:[%s979_s26 + $0x28] sm:$0xff] %vm673_vm2, %v630_v17  ;;  %v592_v26 = vsel %vm584_vm7, %v560_v22, %v488_v20  ;;  %v600_v15 = vsel %vm584_vm7, %v488_v20, %v560_v22 }
 0x10a   : > { %v624_v27 = vsub.f32 0.0, %v592_v26  ;;  %v664_v34 = vsub.f32 0.0, %v600_v15 }
 0x10c   : > { %v632_v44 = vsel %vm616_vm8, %v624_v27, %v592_v26  ;;  %v672_v28 = vsel %vm656_vm9, %v664_v34, %v600_v15 }
 0x10d   : > { %681 = vst.msk [vmem:[%s973_s23 + $0x38] sm:$0xff] %vm673_vm2, %v672_v28  ;;  %689 = vst.msk [vmem:[%s979_s26 + $0x38] sm:$0xff] %vm673_vm2, %v632_v44 }
 0x10e PF: > { %s14_s12 = sadd.s32 1, %s832_s12  }
 0x10f   : > { %p11_p4 = scmp.ge.s32.totalorder %s14_s12, 4  }
 0x111   :  { %13 = sbr.rel (!%p11_p4) target bundleno = 1 (0x1), region = 70 }

</bundles_post_ra>
